<compile_context>
chip_gen: v5e
topology: v5e:2x2
jax: 0.10.0
libtpu: 0.0.40
codegen_flags: <defaults>
</compile_context>

<pallas_src>
import functools

import jax
import jax.numpy as jnp
from jax.experimental import pallas as pl
from jax.experimental.pallas import tpu as pltpu


def _feature_kernel(x_ref, w1_ref, b1_ref, w2_ref, b2_ref, w3_ref, b3_ref,
                    out_ref, *, l_pad):
    """conv1/2/3 (k=1) + ReLU chain + MaxPool1d(3,1) for TB batches per step.

    x_ref:   (1, 1, TB*L_pad) f32 -- TB batches, each strided by L_pad lanes
    w1_ref:  (16, 1)  f32, b1_ref (16, 1) f32
    w2_ref:  (32, 16) bf16, b2_ref (32, 1) f32
    w3_ref:  (64, 32) bf16, b3_ref (64, 1) f32
    out_ref: (TB, 64, L-2) bf16 -- NCL layout, positions on lanes (lane-dense)
    """
    tb, _, lp = out_ref.shape
    tbl = tb * l_pad                                            # packed lane dim

    x = x_ref[0]                                                # (1, TB*L_pad) f32
    # conv1 (Cin=1): outer product + bias + ReLU on the VPU.  Result only feeds
    # the MXU, so cast once to bf16 right away (minimal convert traffic on v5e).
    h1 = jnp.maximum(w1_ref[...] * x + b1_ref[...], 0.0).astype(jnp.bfloat16)
    # maxpool1 / maxpool2 (k=1, s=1) are identities.
    # conv2 / conv3: pointwise channel matmuls on the MXU (bf16 in, f32 acc).
    h2 = jnp.maximum(
        jnp.dot(w2_ref[...], h1, preferred_element_type=jnp.float32)
        + b2_ref[...], 0.0).astype(jnp.bfloat16)                # (32, TBL)
    h3 = jnp.maximum(
        jnp.dot(w3_ref[...], h2, preferred_element_type=jnp.float32)
        + b3_ref[...], 0.0)                                     # (64, TBL) f32
    # MaxPool1d(k=3, s=1) along lanes.  When the packed lane dim is a multiple
    # of 128 (lane-aligned per-batch strides), use XLU rotates -- they occupy
    # the otherwise idle XLU slot and avoid misaligned lane slices.  Windows
    # that wrap around / cross batch boundaries only land in padded tail lanes
    # that are sliced away below, so no contamination reaches the output.
    if tbl % 128 == 0:
        m = jnp.maximum(jnp.maximum(h3, pltpu.roll(h3, tbl - 1, axis=1)),
                        pltpu.roll(h3, tbl - 2, axis=1))        # (64, TBL)
    else:
        m = jnp.maximum(jnp.maximum(h3[:, 0:tbl - 2], h3[:, 1:tbl - 1]),
                        h3[:, 2:tbl])                           # (64, TBL-2)
    m = m.astype(jnp.bfloat16)
    for t in range(tb):                                          # static, small
        # Lane-aligned start t*L_pad when L_pad % 128 == 0.
        out_ref[t] = m[:, t * l_pad:t * l_pad + lp]              # (64, L-2) bf16


def _linear_kernel(r_ref, w_ref, b_ref, o_ref):
    """relu(rows @ W^T + b) for Linear(64 -> 32), one row tile per grid step."""
    acc = jnp.dot(r_ref[...], w_ref[...],
                  preferred_element_type=jnp.float32)            # (RT, 32) f32
    o_ref[...] = jnp.maximum(acc + b_ref[...], 0.0)


def _pick_tb(batch, length_padded, max_lanes=8192, max_tb=64):
    """Largest divisor of `batch` with TB*L_pad <= max_lanes, TB <= max_tb, and
    (when possible) TB <= batch/2 so the grid has >= 2 steps (v7x: 2 cores)."""
    cap = min(max_tb, max(1, max_lanes // max(length_padded, 1)))
    if batch >= 2:
        cap = min(cap, batch // 2)
    cap = max(1, min(cap, batch))
    for cand in range(cap, 0, -1):
        if batch % cand == 0:
            return cand
    return 1


def c1d_flex_forward(x_ncl, params, *, r_tile=4096):
    """x_ncl: (B, 1, L) float32, same convention as the PyTorch module."""
    B, cin, L = x_ncl.shape
    assert cin == 1 and L >= 3
    Lp = L - 2
    w1c, b1c, w2, b2c, w3, b3c, w4t, b4 = params

    # Lane-align per-batch segments when the padding overhead is modest
    # (<= 2x, i.e. L >= 64).  For tiny L the padded-lane waste outweighs the
    # alignment benefit, so fall back to dense packing (slice-based pool).
    L_pad = ((L + 127) // 128) * 128 if L >= 64 else L

    tb = _pick_tb(B, L_pad)
    nb = B // tb

    x_f32 = x_ncl.astype(jnp.float32)
    if L_pad != L:
        x_f32 = jnp.pad(x_f32, ((0, 0), (0, 0), (0, L_pad - L)))
    # Free reshape: block i holds batches [i*tb, (i+1)*tb), each L_pad lanes.
    x_flat = x_f32.reshape(nb, 1, tb * L_pad)

    w2b = w2.astype(jnp.bfloat16)
    w3b = w3.astype(jnp.bfloat16)
    w4b = w4t.astype(jnp.bfloat16)

    # 32 MiB is v7x-safe (64 MiB physical) and ample for the ~13-15 MiB
    # per-step working set at the 8192-lane cap; raise on v5e/v6e only if
    # block sizes are ever grown past that cap.
    compiler_params = pltpu.CompilerParams(
        dimension_semantics=("parallel",),
        vmem_limit_bytes=32 * 1024 * 1024)

    feature_kernel = functools.partial(_feature_kernel, l_pad=L_pad)
    pooled = pl.pallas_call(
        feature_kernel,
        out_shape=jax.ShapeDtypeStruct((B, 64, Lp), jnp.bfloat16),
        grid=(nb,),
        in_specs=[
            pl.BlockSpec((1, 1, tb * L_pad), lambda i: (i, 0, 0)),
            pl.BlockSpec((16, 1), lambda i: (0, 0)),
            pl.BlockSpec((16, 1), lambda i: (0, 0)),
            pl.BlockSpec((32, 16), lambda i: (0, 0)),
            pl.BlockSpec((32, 1), lambda i: (0, 0)),
            pl.BlockSpec((64, 32), lambda i: (0, 0)),
            pl.BlockSpec((64, 1), lambda i: (0, 0)),
        ],
        out_specs=pl.BlockSpec((tb, 64, Lp), lambda i: (i, 0, 0)),
        compiler_params=compiler_params,
    )(x_flat, w1c, b1c, w2b, b2c, w3b, b3c)      # (B, 64, Lp) bf16, NCL layout

    # torch `x.view(-1, 64)` on the contiguous NCL tensor: a pure row-major
    # reshape -> no transpose between the two kernels.
    rows = pooled.reshape(-1, 64)                 # (B*Lp, 64) bf16
    n_rows = rows.shape[0]

    # Full block when it fits; otherwise 4096-row tiles (multiple of 8).  A
    # partial last tile is padded/masked by Pallas, which is safe here.
    rt = n_rows if n_rows <= r_tile else r_tile
    y = pl.pallas_call(
        _linear_kernel,
        out_shape=jax.ShapeDtypeStruct((n_rows, 32), jnp.float32),
        grid=(pl.cdiv(n_rows, rt),),
        in_specs=[
            pl.BlockSpec((rt, 64), lambda i: (i, 0)),
            pl.BlockSpec((64, 32), lambda i: (0, 0)),
            pl.BlockSpec((1, 32), lambda i: (0, 0)),
        ],
        out_specs=pl.BlockSpec((rt, 32), lambda i: (i, 0)),
        compiler_params=compiler_params,
    )(rows, w4b, b4)
    return y


def _reference(x_ncl, params):
    """Pure-JAX f32 reference replicating the PyTorch forward exactly."""
    w1c, b1c, w2, b2c, w3, b3c, w4t, b4 = params
    B, _, L = x_ncl.shape
    Lp = L - 2
    x = x_ncl[:, 0, :].astype(jnp.float32)                           # (B, L)
    h1 = jax.nn.relu(w1c[None] * x[:, None, :] + b1c[None])          # (B, 16, L)
    h2 = jax.nn.relu(jnp.einsum('oc,bcl->bol', w2, h1) + b2c[None])  # (B, 32, L)
    h3 = jax.nn.relu(jnp.einsum('oc,bcl->bol', w3, h2) + b3c[None])  # (B, 64, L)
    p = jnp.maximum(jnp.maximum(h3[..., 0:Lp], h3[..., 1:Lp + 1]),
                    h3[..., 2:Lp + 2])                               # (B, 64, Lp)
    rows = p.reshape(-1, 64)                                         # view(-1, 64)
    return jax.nn.relu(rows @ w4t + b4)


def _init_params(key):
    """Deterministic synthetic parameters (torch-native (out, in) conv layouts)."""
    ks = jax.random.split(key, 8)
    w1c = 0.5 * jax.random.normal(ks[0], (16, 1), jnp.float32)     # conv1.weight
    b1c = 0.1 * jax.random.normal(ks[1], (16, 1), jnp.float32)
    w2 = 0.25 * jax.random.normal(ks[2], (32, 16), jnp.float32)    # conv2.weight
    b2c = 0.1 * jax.random.normal(ks[3], (32, 1), jnp.float32)
    w3 = 0.15 * jax.random.normal(ks[4], (64, 32), jnp.float32)    # conv3.weight
    b3c = 0.1 * jax.random.normal(ks[5], (64, 1), jnp.float32)
    w4t = 0.1 * jax.random.normal(ks[6], (64, 32), jnp.float32)    # linear1.weight.T
    b4 = 0.1 * jax.random.normal(ks[7], (1, 32), jnp.float32)
    return (w1c, b1c, w2, b2c, w3, b3c, w4t, b4)


if __name__ == "__main__":
    key = jax.random.PRNGKey(0)
    k_x, k_p, k_x2 = jax.random.split(key, 3)
    params = _init_params(k_p)

    # Small shape matching the PyTorch module's (B, 1, L) convention; exercises
    # the dense (unaligned, slice-based pooling) path.
    B, L = 2, 16
    x = jax.random.normal(k_x, (B, 1, L), jnp.float32)
    y = jax.block_until_ready(c1d_flex_forward(x, params))
    y_ref = _reference(x, params)
    assert y.shape == (B * (L - 2), 32), y.shape
    # bf16 MXU inputs / bf16 pooled with f32 accumulation -> loose tolerance.
    assert jnp.allclose(y, y_ref, rtol=2e-2, atol=2e-2), "mismatch (small path)"

    # Second small shape exercising the lane-aligned stride + XLU-roll path.
    B2, L2 = 4, 128
    x2 = jax.random.normal(k_x2, (B2, 1, L2), jnp.float32)
    y2 = jax.block_until_ready(c1d_flex_forward(x2, params))
    y2_ref = _reference(x2, params)
    assert y2.shape == (B2 * (L2 - 2), 32), y2.shape
    assert jnp.allclose(y2, y2_ref, rtol=2e-2, atol=2e-2), "mismatch (aligned path)"

    print("KERNEL_OK")
</pallas_src>

<mosaic_0001>
module attributes {stable_mosaic.version = 11 : i64} {
  func.func @_feature_kernel(%arg0: i32, %arg1: memref<1x1x16xf32, #tpu.memory_space<vmem>>, %arg2: memref<16x1xf32, #tpu.memory_space<vmem>>, %arg3: memref<16x1xf32, #tpu.memory_space<vmem>>, %arg4: memref<32x16xbf16, #tpu.memory_space<vmem>>, %arg5: memref<32x1xf32, #tpu.memory_space<vmem>>, %arg6: memref<64x32xbf16, #tpu.memory_space<vmem>>, %arg7: memref<64x1xf32, #tpu.memory_space<vmem>>, %arg8: memref<1x64x14xbf16, #tpu.memory_space<vmem>>) attributes {dimension_semantics = [#tpu.dimension_semantics<parallel>], iteration_bounds = array<i64: 2>, scalar_prefetch = 0 : i64, scratch_operands = 0 : i64, tpu.core_type = #tpu.core_type<tc>, window_params = [{transform_indices = @transform_0, window_bounds = array<i64: 1, 1, 16>}, {pipeline_mode = #tpu.pipeline_mode<synchronous>, transform_indices = @transform_1, window_bounds = array<i64: 16, 1>}, {pipeline_mode = #tpu.pipeline_mode<synchronous>, transform_indices = @transform_2, window_bounds = array<i64: 16, 1>}, {pipeline_mode = #tpu.pipeline_mode<synchronous>, transform_indices = @transform_3, window_bounds = array<i64: 32, 16>}, {pipeline_mode = #tpu.pipeline_mode<synchronous>, transform_indices = @transform_4, window_bounds = array<i64: 32, 1>}, {pipeline_mode = #tpu.pipeline_mode<synchronous>, transform_indices = @transform_5, window_bounds = array<i64: 64, 32>}, {pipeline_mode = #tpu.pipeline_mode<synchronous>, transform_indices = @transform_6, window_bounds = array<i64: 64, 1>}, {transform_indices = @transform_7, window_bounds = array<i64: 1, 64, 14>}]} {
    %c0 = arith.constant 0 : index
    %c0_0 = arith.constant 0 : index
    %c0_1 = arith.constant 0 : index
    %0 = vector.load %arg1[%c0, %c0_0, %c0_1] : memref<1x1x16xf32, #tpu.memory_space<vmem>>, vector<1x1x16xf32>
    %1 = vector.shape_cast %0 : vector<1x1x16xf32> to vector<1x16xf32>
    %c0_2 = arith.constant 0 : index
    %c0_3 = arith.constant 0 : index
    %2 = vector.load %arg2[%c0_2, %c0_3] : memref<16x1xf32, #tpu.memory_space<vmem>>, vector<16x1xf32>
    %3 = vector.broadcast %2 : vector<16x1xf32> to vector<16x16xf32>
    %4 = vector.broadcast %1 : vector<1x16xf32> to vector<16x16xf32>
    %5 = arith.mulf %3, %4 : vector<16x16xf32>
    %c0_4 = arith.constant 0 : index
    %c0_5 = arith.constant 0 : index
    %6 = vector.load %arg3[%c0_4, %c0_5] : memref<16x1xf32, #tpu.memory_space<vmem>>, vector<16x1xf32>
    %7 = vector.broadcast %6 : vector<16x1xf32> to vector<16x16xf32>
    %8 = arith.addf %5, %7 : vector<16x16xf32>
    %cst = arith.constant 0.000000e+00 : f32
    %9 = vector.broadcast %cst : f32 to vector<16x16xf32>
    %10 = arith.maximumf %8, %9 : vector<16x16xf32>
    %11 = arith.truncf %10 : vector<16x16xf32> to vector<16x16xbf16>
    %c0_6 = arith.constant 0 : index
    %c0_7 = arith.constant 0 : index
    %12 = vector.load %arg4[%c0_6, %c0_7] : memref<32x16xbf16, #tpu.memory_space<vmem>>, vector<32x16xbf16>
    %cst_8 = arith.constant dense<0.000000e+00> : vector<32x16xf32>
    %13 = tpu.matmul %12, %11, %cst_8 {dimension_numbers = #tpu.dot_dimension_numbers<[1], [0], [0], [1], [0, 0, 1, 1], [], []>} : vector<32x16xbf16>, vector<16x16xbf16>, vector<32x16xf32> -> vector<32x16xf32>
    %c0_9 = arith.constant 0 : index
    %c0_10 = arith.constant 0 : index
    %14 = vector.load %arg5[%c0_9, %c0_10] : memref<32x1xf32, #tpu.memory_space<vmem>>, vector<32x1xf32>
    %15 = vector.broadcast %14 : vector<32x1xf32> to vector<32x16xf32>
    %16 = arith.addf %13, %15 : vector<32x16xf32>
    %cst_11 = arith.constant 0.000000e+00 : f32
    %17 = vector.broadcast %cst_11 : f32 to vector<32x16xf32>
    %18 = arith.maximumf %16, %17 : vector<32x16xf32>
    %19 = arith.truncf %18 : vector<32x16xf32> to vector<32x16xbf16>
    %c0_12 = arith.constant 0 : index
    %c0_13 = arith.constant 0 : index
    %20 = vector.load %arg6[%c0_12, %c0_13] : memref<64x32xbf16, #tpu.memory_space<vmem>>, vector<64x32xbf16>
    %cst_14 = arith.constant dense<0.000000e+00> : vector<64x16xf32>
    %21 = tpu.matmul %20, %19, %cst_14 {dimension_numbers = #tpu.dot_dimension_numbers<[1], [0], [0], [1], [0, 0, 1, 1], [], []>} : vector<64x32xbf16>, vector<32x16xbf16>, vector<64x16xf32> -> vector<64x16xf32>
    %c0_15 = arith.constant 0 : index
    %c0_16 = arith.constant 0 : index
    %22 = vector.load %arg7[%c0_15, %c0_16] : memref<64x1xf32, #tpu.memory_space<vmem>>, vector<64x1xf32>
    %23 = vector.broadcast %22 : vector<64x1xf32> to vector<64x16xf32>
    %24 = arith.addf %21, %23 : vector<64x16xf32>
    %cst_17 = arith.constant 0.000000e+00 : f32
    %25 = vector.broadcast %cst_17 : f32 to vector<64x16xf32>
    %26 = arith.maximumf %24, %25 : vector<64x16xf32>
    %27 = vector.extract_strided_slice %26 {offsets = [0, 0], sizes = [64, 14], strides = [1, 1]} : vector<64x16xf32> to vector<64x14xf32>
    %28 = vector.extract_strided_slice %26 {offsets = [0, 1], sizes = [64, 14], strides = [1, 1]} : vector<64x16xf32> to vector<64x14xf32>
    %29 = arith.maximumf %27, %28 : vector<64x14xf32>
    %30 = vector.extract_strided_slice %26 {offsets = [0, 2], sizes = [64, 14], strides = [1, 1]} : vector<64x16xf32> to vector<64x14xf32>
    %31 = arith.maximumf %29, %30 : vector<64x14xf32>
    %32 = arith.truncf %31 : vector<64x14xf32> to vector<64x14xbf16>
    %c0_18 = arith.constant 0 : index
    %c0_19 = arith.constant 0 : index
    %c0_20 = arith.constant 0 : index
    %33 = vector.load %arg8[%c0_18, %c0_19, %c0_20] : memref<1x64x14xbf16, #tpu.memory_space<vmem>>, vector<1x64x14xbf16>
    %34 = vector.shape_cast %33 : vector<1x64x14xbf16> to vector<64x14xbf16>
    %35 = vector.shape_cast %32 : vector<64x14xbf16> to vector<1x64x14xbf16>
    tpu.vector_store %arg8[%c0_18, %c0_19, %c0_20], %35 {strides = array<i32>} : memref<1x64x14xbf16, #tpu.memory_space<vmem>>, vector<1x64x14xbf16>,
    return
  }
  func.func @transform_0(%arg0: i32) -> (i32, i32, i32) {
    %c0_i32 = arith.constant 0 : i32
    %c0_i32_0 = arith.constant 0 : i32
    %c0_i32_1 = arith.constant 0 : i32
    return %arg0, %c0_i32, %c0_i32_0 : i32, i32, i32
  }
  func.func @transform_1(%arg0: i32) -> (i32, i32) {
    %c0_i32 = arith.constant 0 : i32
    %c0_i32_0 = arith.constant 0 : i32
    %c0_i32_1 = arith.constant 0 : i32
    return %c0_i32, %c0_i32_0 : i32, i32
  }
  func.func @transform_2(%arg0: i32) -> (i32, i32) {
    %c0_i32 = arith.constant 0 : i32
    %c0_i32_0 = arith.constant 0 : i32
    %c0_i32_1 = arith.constant 0 : i32
    return %c0_i32, %c0_i32_0 : i32, i32
  }
  func.func @transform_3(%arg0: i32) -> (i32, i32) {
    %c0_i32 = arith.constant 0 : i32
    %c0_i32_0 = arith.constant 0 : i32
    %c0_i32_1 = arith.constant 0 : i32
    return %c0_i32, %c0_i32_0 : i32, i32
  }
  func.func @transform_4(%arg0: i32) -> (i32, i32) {
    %c0_i32 = arith.constant 0 : i32
    %c0_i32_0 = arith.constant 0 : i32
    %c0_i32_1 = arith.constant 0 : i32
    return %c0_i32, %c0_i32_0 : i32, i32
  }
  func.func @transform_5(%arg0: i32) -> (i32, i32) {
    %c0_i32 = arith.constant 0 : i32
    %c0_i32_0 = arith.constant 0 : i32
    %c0_i32_1 = arith.constant 0 : i32
    return %c0_i32, %c0_i32_0 : i32, i32
  }
  func.func @transform_6(%arg0: i32) -> (i32, i32) {
    %c0_i32 = arith.constant 0 : i32
    %c0_i32_0 = arith.constant 0 : i32
    %c0_i32_1 = arith.constant 0 : i32
    return %c0_i32, %c0_i32_0 : i32, i32
  }
  func.func @transform_7(%arg0: i32) -> (i32, i32, i32) {
    %c0_i32 = arith.constant 0 : i32
    %c0_i32_0 = arith.constant 0 : i32
    %c0_i32_1 = arith.constant 0 : i32
    return %arg0, %c0_i32, %c0_i32_0 : i32, i32, i32
  }
}

</mosaic_0001>

<bundles_post_ra>
// kernel: tpu_custom_call.1
= control target key start
LH: loop header
LB: loop body
LE: loop exit
PB: predicated region body
PF: predicated region fallthrough
CT: control target
= control target key end

     0   :  { %s802_s24 = smov 0   ;;  %s921_s0 = inlined_call_operand.vmem [shape: f32[2,1,16], index: 0, kind: input, shape index: {}]   ;;  %s922_s1 = inlined_call_operand.vmem [shape: f32[16,1], index: 1, kind: input, shape index: {}]   ;;  %s923_s2 = inlined_call_operand.vmem [shape: f32[16,1], index: 2, kind: input, shape index: {}]   ;;  %s924_s3 = inlined_call_operand.vmem [shape: bf16[32,16], index: 3, kind: input, shape index: {}]   ;;  %s925_s4 = inlined_call_operand.vmem [shape: f32[32,1], index: 4, kind: input, shape index: {}]   ;;  %s926_s5 = inlined_call_operand.vmem [shape: bf16[64,32], index: 5, kind: input, shape index: {}]   ;;  %s927_s6 = inlined_call_operand.vmem [shape: f32[64,1], index: 6, kind: input, shape index: {}]   ;;  %s928_s7 = inlined_call_operand.vmem [shape: bf16[2,64,14], index: 7, kind: output, shape index: {}]  }
   0x1 LB: > { %s646_s25 = sadd.s32 4294967295, %s757_s24   ;;  %p650_p0 = scmp.ge.s32.totalorder %s757_s24, 1  ;;  %s757_s24 = sphi %s802_s24, %s17_s24  }
   0x2   : > { %p235_p1 = scmp.lt.s32.totalorder %s757_s24, 3 }
   0x4   : > { %p236_p2 = pnand %p650_p0, %p235_p1 }
   0x5   : > { %p265_p3 = scmp.lt.s32.totalorder (!%p236_p2), %s646_s25, 1  ;;  %s760_s8 = smov (!%p236_p2), 126  }
   0x6   : > { %239 = sbr.rel (%p236_p2) target bundleno = 603 (0x25b), region = 48  ;;  %s761_s10 = smov (!%p236_p2), 127  }
   0xb   : > { %v292_v0 = vld [vmem:[%s923_s2] sm:$0xff]  ;;  %v759_v2 = vmov 0   ;;  %s930_s25 = smov (!%p265_p3, %s646_s25), 1  ;;  %v293_v3 = vld [vmem:[%s923_s2 + $0x8] sm:$0xff]  ;;  %v389_v7 = vld [vmem:[%s927_s6 + $0x10] sm:$0xff]  ;;  %vm347_vm0 = vcmask 130048  }
   0xc   : > { %v275_v1 = vld [vmem:[%s922_s1] sm:$0xff]  ;;  %708 = vset.pattern.permute.xlu1 %v759_v2  ;;  %707 = vset.pattern.permute.xlu0 %v759_v2  ;;  %s267_s9 = scalar_lea.vmem %s921_s0, %s930_s25  ;;  %v276_v4 = vld [vmem:[%s922_s1 + $0x8] sm:$0xff]  ;;  %v394_v11 = vld [vmem:[%s927_s6 + $0x38] sm:$0xff]  ;;  %vm455_vm1 = vcmask 261120   ;;  %s685_s11 = sshll.u32 %s930_s25, 5  ;;  %vm585_vm2 = vcmask 109568  }
   0xd   : > { %296 = vperm.xlu1 %708, %v292_v0   ;;  %279 = vperm.xlu0 %707, %v275_v1   ;;  %v314_v5 = vld [vmem:[%s925_s4 + $0x8] sm:$0xff]  ;;  %v313_v6 = vld [vmem:[%s925_s4] sm:$0xff]  ;;  %v315_v15 = vld [vmem:[%s925_s4 + $0x10] sm:$0xff]  ;;  %s896_s13 = scalar_lea.vmem %s928_s7, %s685_s11 }
   0xe   : > { %709 = vset.pattern.permute.xlu2 %v759_v2  ;;  %v388_v8 = vld [vmem:[%s927_s6 + $0x8] sm:$0xff]  ;;  %v391_v10 = vld [vmem:[%s927_s6 + $0x20] sm:$0xff]  ;;  %v316_v21 = vld [vmem:[%s925_s4 + $0x18] sm:$0xff] }
   0xf   : > { %v392_v9 = vld [vmem:[%s927_s6 + $0x28] sm:$0xff]  ;;  %v750_v14 = vld [vmem:[%s267_s9] ss:$0 sm:$0xff]  ;;  %329 = vperm.xlu2 %709, %v315_v15   ;;  %v390_v28 = vld [vmem:[%s927_s6 + $0x18] sm:$0xff] }
  0x10   : > { %v686_v26 = vld [vmem:[%s924_s3] sm:$0xff]  ;;  %v687_v29 = vld [vmem:[%s924_s3 + $0x8] sm:$0xff]  ;;  %v393_v30 = vld [vmem:[%s927_s6 + $0x30] sm:$0xff] }
  0x11   : > { %v387_v27 = vld [vmem:[%s927_s6] sm:$0xff]  ;;  %v689_v50 = vld [vmem:[%s926_s5 + $0x8] sm:$0xff]  ;;  %v691_v51 = vld [vmem:[%s926_s5 + $0x18] sm:$0xff] }
  0x12   : > { %v688_v49 = vld [vmem:[%s926_s5] sm:$0xff]  ;;  %v690_v52 = vld [vmem:[%s926_s5 + $0x10] sm:$0xff] }
  0x15   : > { %301 = vperm.xlu1 %708, %v293_v3   ;;  %284 = vperm.xlu0 %707, %v276_v4  }
  0x17   : > { %334 = vperm.xlu2 %709, %v316_v21  }
  0x1d   : > { %324 = vperm.xlu1 %708, %v314_v5   ;;  %319 = vperm.xlu0 %707, %v313_v6  }
  0x1f   : > { %397 = vperm.xlu2 %709, %v387_v27  }
  0x25   : > { %407 = vperm.xlu1 %708, %v389_v7   ;;  %402 = vperm.xlu0 %707, %v388_v8  }
  0x27   : > { %412 = vperm.xlu2 %709, %v390_v28  }
  0x2d   : > { %422 = vperm.xlu1 %708, %v392_v9   ;;  %417 = vperm.xlu0 %707, %v391_v10  }
  0x2f   : > { %427 = vperm.xlu2 %709, %v393_v30  }
  0x35   : > { %432 = vperm.xlu0 %707, %v394_v11  }
  0x69   : > { %v330_v33 = vpop.permute.xlu2 %329 }
  0x71   : > { %v335_v37 = vpop.permute.xlu2 %334 }
  0x79   : > { %v398_v53 = vpop.permute.xlu2 %397 }
  0x7f   : > { %v297_v12 = vpop.permute.xlu1 %296  ;;  %v280_v13 = vpop.permute.xlu0 %279 }
  0x80   : > { %v290_v16 = vmul.f32 %v750_v14, %v280_v13 }
  0x81   : > { %v413_v56 = vpop.permute.xlu2 %412 }
  0x82   : > { %v304_v19 = vadd.f32 %v297_v12, %v290_v16 }
  0x84   : > { %v306_v23 = vmax.f32 %v304_v19, 0.0 }
  0x87   : > { %v285_v17 = vpop.permute.xlu0 %284  ;;  %v302_v20 = vpop.permute.xlu1 %301 }
  0x88   : > { %v291_v18 = vmul.f32 %v750_v14, %v285_v17 }
  0x89   : > { %v428_v3 = vpop.permute.xlu2 %427 }
  0x8a   : > { %v305_v22 = vadd.f32 %v302_v20, %v291_v18 }
  0x8c   : > { %v307_v24 = vmax.f32 %v305_v22, 0.0 }
  0x8e   : > { %v308_v25 = vpack.c.bf16 %v307_v24, %v306_v23 }
  0x8f   : > { %v325_v35 = vpop.permute.xlu1 %324  ;;  %v320_v41 = vpop.permute.xlu0 %319 }
  0x90   : > { %361 = vmatpush.bf16.msra.mxu0 %v308_v25 }
  0x93   : > { %661 = vmatmul.msk.bf16.vlgmr.msra.gmra.mxu0 %vm347_vm0, %v686_v26 }
  0x97   : > { %v403_v54 = vpop.permute.xlu0 %402  ;;  %v408_v1 = vpop.permute.xlu1 %407 }
  0x9f   : > { %v418_v57 = vpop.permute.xlu0 %417  ;;  %v423_v19 = vpop.permute.xlu1 %422 }
  0xa3   : > { %662 = vmatmul.msk.bf16.gmra.mxu0 %vm347_vm0, %v687_v29 }
  0xa7   : > { %v433_v5 = vpop.permute.xlu0 %432 }
 0x110   : > { %v363_v31 = vpop.f32.mrf.mxu0 }
 0x111   : > { %v364_v42 = vadd.f32 %v363_v31, %v320_v41 }
 0x113   : > { %v373_v47 = vmax.f32 %v364_v42, 0.0 }
 0x118   : > { %v365_v32 = vpop.f32.mrf.mxu0 }
 0x119   : > { %v366_v39 = vadd.f32 %v365_v32, %v325_v35 }
 0x11b   : > { %v374_v45 = vmax.f32 %v366_v39, 0.0 }
 0x11d   : > { %v377_v48 = vpack.c.bf16 %v374_v45, %v373_v47 }
 0x120   : > { %v368_v34 = vpop.f32.mrf.mxu0 }
 0x121   : > { %v369_v36 = vadd.f32 %v368_v34, %v330_v33 }
 0x123   : > { %v375_v43 = vmax.f32 %v369_v36, 0.0 }
 0x128   : > { %v370_v38 = vpop.f32.mrf.mxu0 }
 0x129   : > { %v371_v40 = vadd.f32 %v370_v38, %v335_v37 }
 0x12b   : > { %v376_v44 = vmax.f32 %v371_v40, 0.0 }
 0x12d   : > { %v378_v46 = vpack.c.bf16 %v376_v44, %v375_v43 }
 0x12f   : > { %474 = vmatpush.bf16.msra.mxu1 %v378_v46  ;;  %692 = vmatpush.bf16.msra.mxu2 %v378_v46 }
 0x130   : > { %693 = vmatpush.bf16.msra.mxu3 %v378_v46 }
 0x133   : > { %475 = vmatpush.bf16.msra.mxu1 %v377_v48  ;;  %694 = vmatpush.bf16.msra.mxu2 %v377_v48 }
 0x134   : > { %695 = vmatpush.bf16.msra.mxu3 %v377_v48 }
 0x136   : > { %679 = vmatmul.msk.bf16.vlgmr.msra.gmra.mxu1 %vm455_vm1, %v688_v49  ;;  %680 = vmatmul.msk.bf16.vlgmr.msra.gmra.mxu2 %vm455_vm1, %v689_v50 }
 0x137   : > { %682 = vmatmul.msk.bf16.vlgmr.msra.gmra.mxu3 %vm455_vm1, %v691_v51 }
 0x146   : > { %681 = vmatmul.msk.bf16.gmra.mxu2 %vm455_vm1, %v690_v52 }
 0x1b3   : > { %v477_v55 = vpop.f32.mrf.mxu1 }
 0x1b4   : > { %v478_v59 = vadd.f32 %v477_v55, %v398_v53 }
 0x1b6   : > { %v497_v63 = vmax.f32 %v478_v59, 0.0 }
 0x1b9   : > { %v482_v58 = vpop.f32.mrf.mxu2 }
 0x1ba   : > { %v492_v60 = vpop.f32.mrf.mxu3  ;;  %v882_v6 = vadd.f32 %v482_v58, %v408_v1 }
 0x1bb   : > { %v479_v61 = vpop.f32.mrf.mxu1  ;;  %v493_v7 = vadd.f32 %v492_v60, %v428_v3 }
 0x1bc   : > { %v480_v62 = vadd.f32 %v479_v61, %v403_v54  ;;  %v499_v13 = vmax.f32 %v882_v6, 0.0 }
 0x1bd   : > { %v503_v14 = vmax.f32 %v493_v7, 0.0 }
 0x1be   : > { %v498_v0 = vmax.f32 %v480_v62, 0.0 }
 0x1c0   : > { %v715_v2 = vpack.i.bf16 %v498_v0, %v497_v63 }
 0x1c1   : > { %v484_v4 = vpop.f32.mrf.mxu2 }
 0x1c2   : > { %v884_v8 = vadd.f32 %v484_v4, %v413_v56  ;;  %v494_v9 = vpop.f32.mrf.mxu3  ;;  %716 = vrot.lane.b32.xlu2 %v715_v2, %s760_s8  ;;  %711 = vrot.lane.b32.xlu1 %v715_v2, %s761_s10 }
 0x1c3   : > { %v495_v10 = vadd.f32 %v494_v9, %v433_v5 }
 0x1c4   : > { %v500_v11 = vmax.f32 %v884_v8, 0.0 }
 0x1c5   : > { %v504_v12 = vmax.f32 %v495_v10, 0.0 }
 0x1c6   : > { %v720_v15 = vpack.i.bf16 %v500_v11, %v499_v13 }
 0x1c7   : > { %v725_v16 = vpack.i.bf16 %v504_v12, %v503_v14 }
 0x1c9   : > { %v487_v17 = vpop.f32.mrf.mxu2 }
 0x1ca   : > { %721 = vrot.lane.b32.xlu2 %v720_v15, %s761_s10  ;;  %726 = vrot.lane.b32.xlu1 %v725_v16, %s761_s10  ;;  %v488_v18 = vadd.f32 %v487_v17, %v418_v57 }
 0x1cc   : > { %v501_v22 = vmax.f32 %v488_v18, 0.0 }
 0x1d1   : > { %v489_v20 = vpop.f32.mrf.mxu2 }
 0x1d2   : > { %v490_v21 = vadd.f32 %v489_v20, %v423_v19  ;;  %746 = vrot.lane.b32.xlu2 %v725_v16, %s760_s8 }
 0x1d4   : > { %v502_v23 = vmax.f32 %v490_v21, 0.0 }
 0x1d6   : > { %v730_v24 = vpack.i.bf16 %v502_v23, %v501_v22 }
 0x1d8   : > { %731 = vrot.lane.b32.xlu0 %v730_v24, %s761_s10  ;;  %741 = vrot.lane.b32.xlu1 %v730_v24, %s760_s8 }
 0x1e0   : > { %736 = vrot.lane.b32.xlu0 %v720_v15, %s760_s8 }
 0x21c   : > { %v717_v25 = vpop.permute.xlu2 %716 }
 0x21d   : > { %v719_v30 = vunpack.i.h.bf16 %v717_v25  ;;  %v718_v31 = vunpack.i.l.bf16 %v717_v25 }
 0x224   : > { %v722_v26 = vpop.permute.xlu2 %721 }
 0x225   : > { %v724_v58 = vunpack.i.h.bf16 %v722_v26  ;;  %v723_v59 = vunpack.i.l.bf16 %v722_v26 }
 0x227   : > { %v540_v1 = vmax.f32 %v500_v11, %v724_v58  ;;  %v539_v2 = vmax.f32 %v499_v13, %v723_v59 }
 0x22c   : > { %v747_v38 = vpop.permute.xlu2 %746 }
 0x22d   : > { %v749_v42 = vunpack.i.h.bf16 %v747_v38  ;;  %v748_v43 = vunpack.i.l.bf16 %v747_v38 }
 0x234   : > { %v712_v27 = vpop.permute.xlu1 %711 }
 0x235   : > { %v714_v28 = vunpack.i.h.bf16 %v712_v27  ;;  %v713_v29 = vunpack.i.l.bf16 %v712_v27 }
 0x237   : > { %v538_v32 = vmax.f32 %v498_v0, %v714_v28  ;;  %v537_v33 = vmax.f32 %v497_v63, %v713_v29 }
 0x239   : > { %v570_v34 = vmax.f32 %v538_v32, %v719_v30  ;;  %v569_v35 = vmax.f32 %v537_v33, %v718_v31 }
 0x23b   : > { %v578_v36 = vpack.c.bf16 %v570_v34, %v570_v34  ;;  %v577_v37 = vpack.c.bf16 %v569_v35, %v569_v35 }
 0x23c   : > { %v727_v39 = vpop.permute.xlu1 %726 }
 0x23d   : > { %587 = vst.msk [vmem:[%s896_s13 + $0x4] sm:$0xf] %vm585_vm2, %v578_v36  ;;  %v729_v40 = vunpack.i.h.bf16 %v727_v39  ;;  %v728_v41 = vunpack.i.l.bf16 %v727_v39 }
 0x23e   : > { %586 = vst.msk [vmem:[%s896_s13] sm:$0xf] %vm585_vm2, %v577_v37 }
 0x23f   : > { %v544_v44 = vmax.f32 %v504_v12, %v729_v40  ;;  %v543_v45 = vmax.f32 %v503_v14, %v728_v41 }
 0x241   : > { %v576_v46 = vmax.f32 %v544_v44, %v749_v42  ;;  %v575_v47 = vmax.f32 %v543_v45, %v748_v43 }
 0x243   : > { %v584_v48 = vpack.c.bf16 %v576_v46, %v576_v46  ;;  %v583_v49 = vpack.c.bf16 %v575_v47, %v575_v47 }
 0x245   : > { %593 = vst.msk [vmem:[%s896_s13 + $0x1c] sm:$0xf] %vm585_vm2, %v584_v48 }
 0x246   : > { %592 = vst.msk [vmem:[%s896_s13 + $0x18] sm:$0xf] %vm585_vm2, %v583_v49 }
 0x24a   : > { %v732_v50 = vpop.permute.xlu0 %731  ;;  %v742_v51 = vpop.permute.xlu1 %741 }
 0x24b   : > { %v734_v52 = vunpack.i.h.bf16 %v732_v50  ;;  %v733_v53 = vunpack.i.l.bf16 %v732_v50  ;;  %v744_v56 = vunpack.i.h.bf16 %v742_v51  ;;  %v743_v57 = vunpack.i.l.bf16 %v742_v51 }
 0x24d   : > { %v542_v54 = vmax.f32 %v502_v23, %v734_v52  ;;  %v541_v55 = vmax.f32 %v501_v22, %v733_v53 }
 0x24f   : > { %v574_v60 = vmax.f32 %v542_v54, %v744_v56  ;;  %v573_v61 = vmax.f32 %v541_v55, %v743_v57 }
 0x251   : > { %v582_v62 = vpack.c.bf16 %v574_v60, %v574_v60  ;;  %v581_v63 = vpack.c.bf16 %v573_v61, %v573_v61 }
 0x252   : > { %v737_v0 = vpop.permute.xlu0 %736 }
 0x253   : > { %591 = vst.msk [vmem:[%s896_s13 + $0x14] sm:$0xf] %vm585_vm2, %v582_v62  ;;  %v739_v3 = vunpack.i.h.bf16 %v737_v0  ;;  %v738_v4 = vunpack.i.l.bf16 %v737_v0 }
 0x254   : > { %590 = vst.msk [vmem:[%s896_s13 + $0x10] sm:$0xf] %vm585_vm2, %v581_v63 }
 0x255   : > { %v571_v5 = vmax.f32 %v539_v2, %v738_v4  ;;  %v572_v7 = vmax.f32 %v540_v1, %v739_v3 }
 0x257   : > { %v579_v9 = vpack.c.bf16 %v571_v5, %v571_v5  ;;  %v580_v10 = vpack.c.bf16 %v572_v7, %v572_v7 }
 0x259   : > { %588 = vst.msk [vmem:[%s896_s13 + $0x8] sm:$0xf] %vm585_vm2, %v579_v9 }
 0x25a   : > { %589 = vst.msk [vmem:[%s896_s13 + $0xc] sm:$0xf] %vm585_vm2, %v580_v10 }
 0x25b PF: > { %s17_s24 = sadd.s32 1, %s757_s24  }
 0x25c   : > { %p14_p4 = scmp.ge.s32.totalorder %s17_s24, 4  }
 0x25e   :  { %16 = sbr.rel (!%p14_p4) target bundleno = 1 (0x1), region = 78 }

</bundles_post_ra>
